<compile_context>
chip_gen: v7x
topology: tpu7x:2x2x1
jax: 0.10.0
libtpu: 0.0.40
codegen_flags: <defaults>
</compile_context>

<pallas_src>
import functools
import math

import jax
import jax.numpy as jnp
from jax import lax
from jax.experimental import pallas as pl
from jax.experimental.pallas import tpu as pltpu


def _mlp_kernel(x_ref, w1_ref, b1_ref, w2_ref, b2_ref,
                w3_ref, b3_ref, w4_ref, b4_ref, o_ref):
    # x_ref : [blk, F]  f32 (natural batch-major layout)
    # w1    : [64, F]   bf16    b1: [64, 1] f32
    # w2    : [32, 64]  bf16    b2: [32, 1] f32
    # w3    : [16, 32]  bf16    b3: [16, 1] f32
    # w4    : [16, 1]   f32     b4: [1, 1]  f32
    # o_ref : [1, blk]  f32 (lane-dense output row)
    x = x_ref[...].astype(jnp.bfloat16)                       # cast in-kernel

    # Layer 1: contract over F on both operands -> [64, blk] (batch on lanes).
    h = lax.dot_general(w1_ref[...], x,
                        dimension_numbers=(((1,), (1,)), ((), ())),
                        preferred_element_type=jnp.float32)
    h = jnp.maximum(h + b1_ref[...], 0.0)                     # [64, blk] f32

    # Layer 2: [32, 64] @ [64, blk]
    h = jnp.dot(w2_ref[...], h.astype(jnp.bfloat16),
                preferred_element_type=jnp.float32)
    h = jnp.maximum(h + b2_ref[...], 0.0)                     # [32, blk] f32

    # Layer 3: [16, 32] @ [32, blk]
    h = jnp.dot(w3_ref[...], h.astype(jnp.bfloat16),
                preferred_element_type=jnp.float32)
    h = jnp.maximum(h + b3_ref[...], 0.0)                     # [16, blk] f32

    # Layer 4 (16 -> 1): VPU multiply + sublane reduce (XLU), MXU stays free.
    out = jnp.sum(w4_ref[...] * h, axis=0, keepdims=True) + b4_ref[...]
    o_ref[...] = out.astype(o_ref.dtype)                      # [1, blk] dense


def _round_up(n, m):
    return ((n + m - 1) // m) * m


def _cdiv(a, b):
    return (a + b - 1) // b


def _vmem_limit_for(need_bytes):
    cap = 64 << 20                      # v7x per-TC physical VMEM (safe floor)
    try:
        info = pltpu.get_tpu_info()
        cap = int(getattr(info, "vmem_capacity_bytes", cap) or cap)
    except Exception:
        pass
    # Never request the full physical VMEM; leave ~1/8 headroom.
    return int(min(max(2 * need_bytes, 32 << 20), (cap * 7) // 8))


@functools.partial(jax.jit, static_argnames=("block_b",))
def bb_model_forward(x, params, block_b=2048):
    """x: [B, input_size] float32 -> [B, 1] float32."""
    w1, b1, w2, b2, w3, b3, w4, b4 = params
    B, F = x.shape

    # Pad F to a sublane multiple only if needed (no-op for F=16); padding to
    # 128 lanes would multiply the dominant HBM read of x, so we do not.
    F_pad = _round_up(F, 8)
    if F_pad != F:
        x = jnp.pad(x, ((0, 0), (0, F_pad - F)))
        w1 = jnp.pad(w1, ((0, 0), (0, F_pad - F)))

    # Tile choice: big 128-multiple tiles, and >= 2 grid steps once B > 128 so
    # the "parallel" batch axis can be split across v7x's two TensorCores.
    steps = max(_cdiv(B, int(block_b)), 2 if B > 128 else 1)
    blk = _round_up(_cdiv(B, steps), 128)
    b_pad = _round_up(B, blk)
    if b_pad != B:
        # Padded rows compute ReLU(bias) garbage; sliced off below.
        x = jnp.pad(x, ((0, b_pad - B), (0, 0)))

    # Tiny per-layer weight casts/transposes (a few KB, negligible).
    w1b = w1.astype(jnp.bfloat16)                 # [64, F_pad]
    w2b = w2.astype(jnp.bfloat16)                 # [32, 64]
    w3b = w3.astype(jnp.bfloat16)                 # [16, 32]
    w4t = w4.T                                    # [16, 1] f32 (VPU path)

    # VMEM budget: double-buffered x / out tiles, resident weights/biases,
    # plus the f32 (+bf16) activation intermediates.
    x_bytes = 2 * blk * F_pad * 4
    o_bytes = 2 * blk * 4
    w_bytes = 2 * (2 * (w1b.size + w2b.size + w3b.size) + 4 * w4t.size)
    bias_bytes = 2 * 4 * (b1.size + b2.size + b3.size + b4.size)
    act_bytes = (64 + 32 + 16) * blk * 4 * 2
    vmem_limit = _vmem_limit_for(x_bytes + o_bytes + w_bytes
                                 + bias_bytes + act_bytes)

    def resident(arr):
        nd = arr.ndim
        # Same block every grid step -> stays VMEM-resident for the kernel.
        return pl.BlockSpec(arr.shape, lambda i, _nd=nd: (0,) * _nd)

    out_t = pl.pallas_call(
        _mlp_kernel,
        out_shape=jax.ShapeDtypeStruct((1, b_pad), jnp.float32),
        grid_spec=pltpu.PrefetchScalarGridSpec(
            num_scalar_prefetch=0,
            grid=(b_pad // blk,),
            in_specs=[
                pl.BlockSpec((blk, F_pad), lambda i: (i, 0)),   # x, natural layout
                resident(w1b), resident(b1),
                resident(w2b), resident(b2),
                resident(w3b), resident(b3),
                resident(w4t), resident(b4),
            ],
            out_specs=pl.BlockSpec((1, blk), lambda i: (0, i)),  # lane-dense row
        ),
        compiler_params=pltpu.CompilerParams(
            dimension_semantics=("parallel",),
            vmem_limit_bytes=vmem_limit),
    )(x, w1b, b1, w2b, b2, w3b, b3, w4t, b4)

    # [1, b_pad] -> [B, 1]; contiguous row, so this is effectively a reshape.
    return out_t[:, :B].T


def init_params(key, input_size):
    """PyTorch nn.Linear-style init; weights stored as [out, in], bias [out, 1]."""
    dims = [(input_size, 64), (64, 32), (32, 16), (16, 1)]
    params = []
    for fan_in, fan_out in dims:
        key, kw, kb = jax.random.split(key, 3)
        bound = 1.0 / math.sqrt(fan_in)
        w = jax.random.uniform(kw, (fan_out, fan_in), jnp.float32, -bound, bound)
        b = jax.random.uniform(kb, (fan_out, 1), jnp.float32, -bound, bound)
        params.extend([w, b])
    return tuple(params)


def reference_forward(x, params):
    """Same math as the kernel: bf16 operands layers 1-3, f32 last layer."""
    w1, b1, w2, b2, w3, b3, w4, b4 = params

    def lin_bf16(h, w, b):
        return jnp.dot(h.astype(jnp.bfloat16), w.astype(jnp.bfloat16).T,
                       preferred_element_type=jnp.float32) + b.T

    h = jnp.maximum(lin_bf16(x, w1, b1), 0.0)
    h = jnp.maximum(lin_bf16(h, w2, b2), 0.0)
    h = jnp.maximum(lin_bf16(h, w3, b3), 0.0)
    return jnp.dot(h, w4.T) + b4.T


if __name__ == "__main__":
    key = jax.random.PRNGKey(0)
    key, kx = jax.random.split(key)

    batch, input_size = 32, 16
    # Inputs are min-max normalized in the original pipeline -> sample in [0, 1).
    x = jax.random.uniform(kx, (batch, input_size), jnp.float32)

    params = init_params(key, input_size)

    out = bb_model_forward(x, params)
    out = jax.block_until_ready(out)

    ref = reference_forward(x, params)
    assert out.shape == (batch, 1)
    assert jnp.allclose(out, ref, atol=2e-3, rtol=2e-3), (
        float(jnp.max(jnp.abs(out - ref))))

    print("KERNEL_OK")
</pallas_src>

<mosaic_0001>
module attributes {stable_mosaic.version = 11 : i64} {
  func.func @_mlp_kernel(%arg0: i32, %arg1: memref<128x16xf32, #tpu.memory_space<vmem>>, %arg2: memref<64x16xbf16, #tpu.memory_space<vmem>>, %arg3: memref<64x1xf32, #tpu.memory_space<vmem>>, %arg4: memref<32x64xbf16, #tpu.memory_space<vmem>>, %arg5: memref<32x1xf32, #tpu.memory_space<vmem>>, %arg6: memref<16x32xbf16, #tpu.memory_space<vmem>>, %arg7: memref<16x1xf32, #tpu.memory_space<vmem>>, %arg8: memref<16x1xf32, #tpu.memory_space<vmem>>, %arg9: memref<1x1xf32, #tpu.memory_space<vmem>>, %arg10: memref<1x128xf32, #tpu.memory_space<vmem>>) attributes {dimension_semantics = [#tpu.dimension_semantics<parallel>], iteration_bounds = array<i64: 1>, scalar_prefetch = 0 : i64, scratch_operands = 0 : i64, tpu.core_type = #tpu.core_type<tc>, window_params = [{transform_indices = @transform_0, window_bounds = array<i64: 128, 16>}, {pipeline_mode = #tpu.pipeline_mode<synchronous>, transform_indices = @transform_1, window_bounds = array<i64: 64, 16>}, {pipeline_mode = #tpu.pipeline_mode<synchronous>, transform_indices = @transform_2, window_bounds = array<i64: 64, 1>}, {pipeline_mode = #tpu.pipeline_mode<synchronous>, transform_indices = @transform_3, window_bounds = array<i64: 32, 64>}, {pipeline_mode = #tpu.pipeline_mode<synchronous>, transform_indices = @transform_4, window_bounds = array<i64: 32, 1>}, {pipeline_mode = #tpu.pipeline_mode<synchronous>, transform_indices = @transform_5, window_bounds = array<i64: 16, 32>}, {pipeline_mode = #tpu.pipeline_mode<synchronous>, transform_indices = @transform_6, window_bounds = array<i64: 16, 1>}, {pipeline_mode = #tpu.pipeline_mode<synchronous>, transform_indices = @transform_7, window_bounds = array<i64: 16, 1>}, {pipeline_mode = #tpu.pipeline_mode<synchronous>, transform_indices = @transform_8, window_bounds = array<i64: 1, 1>}, {transform_indices = @transform_9, window_bounds = array<i64: 1, 128>}]} {
    %c0 = arith.constant 0 : index
    %c0_0 = arith.constant 0 : index
    %0 = vector.load %arg1[%c0, %c0_0] : memref<128x16xf32, #tpu.memory_space<vmem>>, vector<128x16xf32>
    %1 = arith.truncf %0 : vector<128x16xf32> to vector<128x16xbf16>
    %c0_1 = arith.constant 0 : index
    %c0_2 = arith.constant 0 : index
    %2 = vector.load %arg2[%c0_1, %c0_2] : memref<64x16xbf16, #tpu.memory_space<vmem>>, vector<64x16xbf16>
    %cst = arith.constant dense<0.000000e+00> : vector<64x128xf32>
    %3 = tpu.matmul %2, %1, %cst {dimension_numbers = #tpu.dot_dimension_numbers<[1], [1], [0], [0], [0, 0, 1, 0], [], []>} : vector<64x16xbf16>, vector<128x16xbf16>, vector<64x128xf32> -> vector<64x128xf32>
    %c0_3 = arith.constant 0 : index
    %c0_4 = arith.constant 0 : index
    %4 = vector.load %arg3[%c0_3, %c0_4] : memref<64x1xf32, #tpu.memory_space<vmem>>, vector<64x1xf32>
    %5 = vector.broadcast %4 : vector<64x1xf32> to vector<64x128xf32>
    %6 = arith.addf %3, %5 : vector<64x128xf32>
    %cst_5 = arith.constant 0.000000e+00 : f32
    %7 = vector.broadcast %cst_5 : f32 to vector<64x128xf32>
    %8 = arith.maximumf %6, %7 : vector<64x128xf32>
    %c0_6 = arith.constant 0 : index
    %c0_7 = arith.constant 0 : index
    %9 = vector.load %arg4[%c0_6, %c0_7] : memref<32x64xbf16, #tpu.memory_space<vmem>>, vector<32x64xbf16>
    %10 = arith.truncf %8 : vector<64x128xf32> to vector<64x128xbf16>
    %cst_8 = arith.constant dense<0.000000e+00> : vector<32x128xf32>
    %11 = tpu.matmul %9, %10, %cst_8 {dimension_numbers = #tpu.dot_dimension_numbers<[1], [0], [0], [1], [0, 0, 1, 1], [], []>} : vector<32x64xbf16>, vector<64x128xbf16>, vector<32x128xf32> -> vector<32x128xf32>
    %c0_9 = arith.constant 0 : index
    %c0_10 = arith.constant 0 : index
    %12 = vector.load %arg5[%c0_9, %c0_10] : memref<32x1xf32, #tpu.memory_space<vmem>>, vector<32x1xf32>
    %13 = vector.broadcast %12 : vector<32x1xf32> to vector<32x128xf32>
    %14 = arith.addf %11, %13 : vector<32x128xf32>
    %cst_11 = arith.constant 0.000000e+00 : f32
    %15 = vector.broadcast %cst_11 : f32 to vector<32x128xf32>
    %16 = arith.maximumf %14, %15 : vector<32x128xf32>
    %c0_12 = arith.constant 0 : index
    %c0_13 = arith.constant 0 : index
    %17 = vector.load %arg6[%c0_12, %c0_13] : memref<16x32xbf16, #tpu.memory_space<vmem>>, vector<16x32xbf16>
    %18 = arith.truncf %16 : vector<32x128xf32> to vector<32x128xbf16>
    %cst_14 = arith.constant dense<0.000000e+00> : vector<16x128xf32>
    %19 = tpu.matmul %17, %18, %cst_14 {dimension_numbers = #tpu.dot_dimension_numbers<[1], [0], [0], [1], [0, 0, 1, 1], [], []>} : vector<16x32xbf16>, vector<32x128xbf16>, vector<16x128xf32> -> vector<16x128xf32>
    %c0_15 = arith.constant 0 : index
    %c0_16 = arith.constant 0 : index
    %20 = vector.load %arg7[%c0_15, %c0_16] : memref<16x1xf32, #tpu.memory_space<vmem>>, vector<16x1xf32>
    %21 = vector.broadcast %20 : vector<16x1xf32> to vector<16x128xf32>
    %22 = arith.addf %19, %21 : vector<16x128xf32>
    %cst_17 = arith.constant 0.000000e+00 : f32
    %23 = vector.broadcast %cst_17 : f32 to vector<16x128xf32>
    %24 = arith.maximumf %22, %23 : vector<16x128xf32>
    %c0_18 = arith.constant 0 : index
    %c0_19 = arith.constant 0 : index
    %25 = vector.load %arg8[%c0_18, %c0_19] : memref<16x1xf32, #tpu.memory_space<vmem>>, vector<16x1xf32>
    %26 = vector.broadcast %25 : vector<16x1xf32> to vector<16x128xf32>
    %27 = arith.mulf %26, %24 : vector<16x128xf32>
    %cst_20 = arith.constant dense<0.000000e+00> : vector<128xf32>
    %28 = vector.multi_reduction <add>, %27, %cst_20 [0] : vector<16x128xf32> to vector<128xf32>
    %29 = vector.shape_cast %28 : vector<128xf32> to vector<1x128xf32>
    %c0_21 = arith.constant 0 : index
    %c0_22 = arith.constant 0 : index
    %30 = vector.load %arg9[%c0_21, %c0_22] : memref<1x1xf32, #tpu.memory_space<vmem>>, vector<1x1xf32>
    %31 = vector.broadcast %30 : vector<1x1xf32> to vector<1x128xf32>
    %32 = arith.addf %29, %31 : vector<1x128xf32>
    %c0_23 = arith.constant 0 : index
    %c0_24 = arith.constant 0 : index
    %33 = vector.load %arg10[%c0_23, %c0_24] : memref<1x128xf32, #tpu.memory_space<vmem>>, vector<1x128xf32>
    tpu.vector_store %arg10[%c0_23, %c0_24], %32 {strides = array<i32>} : memref<1x128xf32, #tpu.memory_space<vmem>>, vector<1x128xf32>,
    return
  }
  func.func @transform_0(%arg0: i32) -> (i32, i32) {
    %c0_i32 = arith.constant 0 : i32
    %c0_i32_0 = arith.constant 0 : i32
    return %arg0, %c0_i32 : i32, i32
  }
  func.func @transform_1(%arg0: i32) -> (i32, i32) {
    %c0_i32 = arith.constant 0 : i32
    %c0_i32_0 = arith.constant 0 : i32
    %c0_i32_1 = arith.constant 0 : i32
    return %c0_i32, %c0_i32_0 : i32, i32
  }
  func.func @transform_2(%arg0: i32) -> (i32, i32) {
    %c0_i32 = arith.constant 0 : i32
    %c0_i32_0 = arith.constant 0 : i32
    %c0_i32_1 = arith.constant 0 : i32
    return %c0_i32, %c0_i32_0 : i32, i32
  }
  func.func @transform_3(%arg0: i32) -> (i32, i32) {
    %c0_i32 = arith.constant 0 : i32
    %c0_i32_0 = arith.constant 0 : i32
    %c0_i32_1 = arith.constant 0 : i32
    return %c0_i32, %c0_i32_0 : i32, i32
  }
  func.func @transform_4(%arg0: i32) -> (i32, i32) {
    %c0_i32 = arith.constant 0 : i32
    %c0_i32_0 = arith.constant 0 : i32
    %c0_i32_1 = arith.constant 0 : i32
    return %c0_i32, %c0_i32_0 : i32, i32
  }
  func.func @transform_5(%arg0: i32) -> (i32, i32) {
    %c0_i32 = arith.constant 0 : i32
    %c0_i32_0 = arith.constant 0 : i32
    %c0_i32_1 = arith.constant 0 : i32
    return %c0_i32, %c0_i32_0 : i32, i32
  }
  func.func @transform_6(%arg0: i32) -> (i32, i32) {
    %c0_i32 = arith.constant 0 : i32
    %c0_i32_0 = arith.constant 0 : i32
    %c0_i32_1 = arith.constant 0 : i32
    return %c0_i32, %c0_i32_0 : i32, i32
  }
  func.func @transform_7(%arg0: i32) -> (i32, i32) {
    %c0_i32 = arith.constant 0 : i32
    %c0_i32_0 = arith.constant 0 : i32
    %c0_i32_1 = arith.constant 0 : i32
    return %c0_i32, %c0_i32_0 : i32, i32
  }
  func.func @transform_8(%arg0: i32) -> (i32, i32) {
    %c0_i32 = arith.constant 0 : i32
    %c0_i32_0 = arith.constant 0 : i32
    %c0_i32_1 = arith.constant 0 : i32
    return %c0_i32, %c0_i32_0 : i32, i32
  }
  func.func @transform_9(%arg0: i32) -> (i32, i32) {
    %c0_i32 = arith.constant 0 : i32
    %c0_i32_0 = arith.constant 0 : i32
    return %c0_i32, %arg0 : i32, i32
  }
}

</mosaic_0001>

<bundles_post_ra>
// kernel: bb_model_forward.1
= control target key start
LH: loop header
LB: loop body
LE: loop exit
PB: predicated region body
PF: predicated region fallthrough
CT: control target
= control target key end

     0   :  { %vm135_vm0 = vcmask 130048   ;;  %v551_v3 = vmov 0   ;;  %vm287_vm1 = vcmask 523264   ;;  %vm553_vm2 = vmmov 0   ;;  %s749_s0 = inlined_call_operand.vmem [shape: f32[128,16], index: 0, kind: input, shape index: {}]   ;;  %s750_s8 = inlined_call_operand.<no memory space> [shape: f32[1,1], index: 8, kind: input, shape index: {}]   ;;  %s751_s1 = inlined_call_operand.vmem [shape: bf16[64,16], index: 1, kind: input, shape index: {}]   ;;  %s752_s2 = inlined_call_operand.vmem [shape: f32[64,1], index: 2, kind: input, shape index: {}]   ;;  %s753_s4 = inlined_call_operand.vmem [shape: f32[32,1], index: 4, kind: input, shape index: {}]   ;;  %s754_s6 = inlined_call_operand.vmem [shape: f32[16,1], index: 6, kind: input, shape index: {}]   ;;  %s755_s7 = inlined_call_operand.vmem [shape: f32[16,1], index: 7, kind: input, shape index: {}]   ;;  %s756_s3 = inlined_call_operand.vmem [shape: bf16[32,64], index: 3, kind: input, shape index: {}]   ;;  %s757_s5 = inlined_call_operand.vmem [shape: bf16[16,32], index: 5, kind: input, shape index: {}]   ;;  %s758_s9 = inlined_call_operand.vmem [shape: f32[1,128], index: 9, kind: output, shape index: {}]  }
   0x1   :  { %v35_v0 = vld [vmem:[%s749_s0] sm:$0xff]  ;;  %v36_v1 = vld [vmem:[%s749_s0 + $0x8] sm:$0xff]  ;;  %v37_v2 = vld [vmem:[%s749_s0 + $0x10] sm:$0xff]  ;;  %542 = vset.pattern.permute.xlu0 %v551_v3  ;;  %543 = vset.pattern.permute.xlu1 %v551_v3  ;;  %v14_v4 = vstv %s750_s8  ;;  %vm368_vm3 = vcmask 261120  }
   0x2   :  { %v51_v5 = vpack.c.bf16 %v36_v1, %v35_v0  ;;  %v38_v6 = vld [vmem:[%s749_s0 + $0x18] sm:$0xff]  ;;  %15 = vst [vmem:[#allocation2] sm:$0x1] %v14_v4  ;;  %v39_v9 = vld [vmem:[%s749_s0 + $0x20] sm:$0xff]  ;;  %v40_v10 = vld [vmem:[%s749_s0 + $0x28] sm:$0xff] }
   0x3   :  { %v52_v7 = vpack.c.bf16 %v38_v6, %v37_v2  ;;  %v544_v11 = vld [vmem:[%s751_s1] sm:$0xff]   ;;  %v53_v13 = vpack.c.bf16 %v40_v10, %v39_v9  ;;  %v69_v15 = vld [vmem:[%s752_s2 + $0x10] sm:$0xff]  ;;  %v68_v16 = vld [vmem:[%s752_s2 + $0x8] sm:$0xff] }
   0x4   :  { %531 = vmatprep.subr.msk.bf16.mxu0 %vm135_vm0, %v51_v5  ;;  %v149_v8 = vsel %vm135_vm0, %v51_v5, 0  ;;  %503 = vmatprep.mubr.msk.bf16.mxu0 %vm135_vm0, %v544_v11  ;;  %v67_v14 = vld [vmem:[%s752_s2] sm:$0xff]  ;;  %v70_v17 = vld [vmem:[%s752_s2 + $0x18] sm:$0xff]  ;;  %v41_v18 = vld [vmem:[%s749_s0 + $0x30] sm:$0xff] }
   0x5   :  { %488 = vmatpush3.bf16.xpose.msra.mxu0 %v149_v8  ;;  %v152_v12 = vsel %vm135_vm0, %v52_v7, 0  ;;  %77 = vperm.xlu0 %542, %v67_v14   ;;  %v42_v19 = vld [vmem:[%s749_s0 + $0x38] sm:$0xff]  ;;  %v71_v20 = vld [vmem:[%s752_s2 + $0x20] sm:$0xff]  ;;  %v72_v21 = vld [vmem:[%s752_s2 + $0x28] sm:$0xff]  ;;  %v155_v22 = vsel %vm135_vm0, %v53_v13, 0 }
   0x6   :  { %532 = vmatprep.subr.msk.bf16.mxu0 %vm135_vm0, %v52_v7  ;;  %87 = vperm.xlu1 %543, %v69_v15   ;;  %v54_v23 = vpack.c.bf16 %v42_v19, %v41_v18  ;;  %v73_v24 = vld [vmem:[%s752_s2 + $0x30] sm:$0xff]  ;;  %v74_v25 = vld [vmem:[%s752_s2 + $0x38] sm:$0xff]  ;;  %v43_v26 = vld [vmem:[%s749_s0 + $0x40] sm:$0xff] }
   0x7   :  { %v44_v27 = vld [vmem:[%s749_s0 + $0x48] sm:$0xff]  ;;  %v253_v28 = vld [vmem:[%s753_s4] sm:$0xff]  ;;  %v255_v32 = vld [vmem:[%s753_s4 + $0x10] sm:$0xff] }
   0x8   :  { %v254_v29 = vld [vmem:[%s753_s4 + $0x8] sm:$0xff]  ;;  %v158_v30 = vsel %vm135_vm0, %v54_v23, 0  ;;  %v55_v31 = vpack.c.bf16 %v44_v27, %v43_v26  ;;  %v256_v33 = vld [vmem:[%s753_s4 + $0x18] sm:$0xff]  ;;  %v45_v34 = vld [vmem:[%s749_s0 + $0x50] sm:$0xff] }
   0x9   :  { %82 = vperm.xlu0 %542, %v68_v16   ;;  %v46_v35 = vld [vmem:[%s749_s0 + $0x58] sm:$0xff]  ;;  %v351_v36 = vld [vmem:[%s754_s6] sm:$0xff]  ;;  %v352_v37 = vld [vmem:[%s754_s6 + $0x8] sm:$0xff] }
   0xa   :  { %92 = vperm.xlu1 %543, %v70_v17   ;;  %v161_v38 = vsel %vm135_vm0, %v55_v31, 0  ;;  %v56_v39 = vpack.c.bf16 %v46_v35, %v45_v34  ;;  %v415_v40 = vld [vmem:[%s755_s7] sm:$0xff]  ;;  %v416_v41 = vld [vmem:[%s755_s7 + $0x8] sm:$0xff]  ;;  %v49_v47 = vld [vmem:[%s749_s0 + $0x70] sm:$0xff] }
   0xb   :  { %v47_v42 = vld [vmem:[%s749_s0 + $0x60] sm:$0xff]  ;;  %v48_v43 = vld [vmem:[%s749_s0 + $0x68] sm:$0xff]  ;;  %v50_v48 = vld [vmem:[%s749_s0 + $0x78] sm:$0xff] }
   0xc   :  { %v436_v44 = vld [vmem:[#allocation2] sm:$0x1]  ;;  %v164_v45 = vsel %vm135_vm0, %v56_v39, 0  ;;  %v57_v46 = vpack.c.bf16 %v48_v43, %v47_v42  ;;  %v58_v50 = vpack.c.bf16 %v50_v48, %v49_v47  ;;  %v545_v52 = vld [vmem:[%s751_s1 + $0x8] sm:$0xff]   ;;  %v546_v53 = vld [vmem:[%s751_s1 + $0x10] sm:$0xff]  }
   0xd   :  { %490 = vmatpush3.bf16.xpose.msra.mxu0 %v152_v12  ;;  %97 = vperm.xlu0 %542, %v71_v20   ;;  %v547_v54 = vld [vmem:[%s751_s1 + $0x18] sm:$0xff]   ;;  %v548_v55 = vld [vmem:[%s756_s3] sm:$0xff]  }
   0xe   :  { %533 = vmatprep.subr.msk.bf16.mxu0 %vm135_vm0, %v53_v13  ;;  %102 = vperm.xlu1 %543, %v72_v21   ;;  %v167_v49 = vsel %vm135_vm0, %v57_v46, 0  ;;  %v170_v51 = vsel %vm135_vm0, %v58_v50, 0  ;;  %v550_v48 = vld [vmem:[%s757_s5] sm:$0xff]  }
   0xf   :  { %519 = vmatprep.mubr.msk.bf16.mxu1 %vm287_vm1, %v548_v55 }
  0x11   :  { %107 = vperm.xlu0 %542, %v73_v24  }
  0x12   :  { %112 = vperm.xlu1 %543, %v74_v25  }
  0x15   :  { %492 = vmatpush3.bf16.xpose.msra.mxu0 %v155_v22  ;;  %259 = vperm.xlu0 %542, %v253_v28   ;;  %v549_v28 = vld [vmem:[%s756_s3 + $0x8] sm:$0xff]  }
  0x16   :  { %534 = vmatprep.subr.msk.bf16.mxu0 %vm135_vm0, %v54_v23  ;;  %264 = vperm.xlu1 %543, %v254_v29   ;;  %v552_v29 = vmov 0.0  }
  0x19   :  { %269 = vperm.xlu0 %542, %v255_v32  }
  0x1a   :  { %274 = vperm.xlu1 %543, %v256_v33  }
  0x1d   :  { %494 = vmatpush3.bf16.xpose.msra.mxu0 %v158_v30  ;;  %355 = vperm.xlu0 %542, %v351_v36  }
  0x1e   :  { %535 = vmatprep.subr.msk.bf16.mxu0 %vm135_vm0, %v55_v31  ;;  %360 = vperm.xlu1 %543, %v352_v37  }
  0x21   :  { %419 = vperm.xlu0 %542, %v415_v40  }
  0x22   :  { %424 = vperm.xlu1 %543, %v416_v41  }
  0x25   :  { %496 = vmatpush3.bf16.xpose.msra.mxu0 %v161_v38  ;;  %439 = vperm.xlu0 %542, %v436_v44  }
  0x26   :  { %536 = vmatprep.subr.msk.bf16.mxu0 %vm135_vm0, %v56_v39 }
  0x2d   :  { %498 = vmatpush3.bf16.xpose.msra.mxu0 %v164_v45 }
  0x2e   :  { %537 = vmatprep.subr.msk.bf16.mxu0 %vm135_vm0, %v57_v46 }
  0x35   :  { %500 = vmatpush3.bf16.xpose.msra.mxu0 %v167_v49 }
  0x36   :  { %538 = vmatprep.subr.msk.bf16.mxu0 %vm135_vm0, %v58_v50 }
  0x3d   :  { %502 = vmatpush3.bf16.xpose.msra.mxu0 %v170_v51 }
  0x44   :  { %504 = vmatmul.mubr.msk.bf16.vlgmr.msra.gmra.mrb[0].mxu0 %vm135_vm0, %v545_v52 }
  0x45   :  { %507 = vmatprep.mubr.msk.bf16.mxu0 %vm135_vm0, %v546_v53 }
  0x4c   :  { %508 = vmatmul.mubr.msk.bf16.gmra.mrb[4].mxu0 %vm135_vm0, %v547_v54 }
  0x84   :  { %v78_v56 = vpop.permute.xlu0 %77 }
  0x85   :  { %v88_v57 = vpop.permute.xlu1 %87 }
  0x88   :  { %v83_v58 = vpop.permute.xlu0 %82 }
  0x89   :  { %v93_v59 = vpop.permute.xlu1 %92 }
  0x8c   :  { %v98_v63 = vpop.permute.xlu0 %97 }
  0x8d   :  { %v103_v4 = vpop.permute.xlu1 %102 }
  0x90   :  { %v108_v11 = vpop.permute.xlu0 %107 }
  0x91   :  { %v113_v16 = vpop.permute.xlu1 %112 }
  0x94   :  { %v260_v30 = vpop.permute.xlu0 %259 }
  0x95   :  { %v265_v31 = vpop.permute.xlu1 %264 }
  0x98   :  { %v270_v32 = vpop.permute.xlu0 %269 }
  0x99   :  { %v275_v36 = vpop.permute.xlu1 %274 }
  0x9c   :  { %v356_v49 = vpop.permute.xlu0 %355 }
  0x9d   :  { %v361_v50 = vpop.permute.xlu1 %360 }
 0x117   :  { %v505_v60 = vpop.f32.mrb[0].mxu0 }
 0x118   :  { %v215_v61 = vadd.f32 %v505_v60, %v88_v57  ;;  %v206_v62 = vpop.f32.mrb[1].mxu0  ;;  %v425_v60 = vpop.permute.xlu1 %424 }
 0x119   :  { %v207_v0 = vadd.f32 %v206_v62, %v78_v56  ;;  %v506_v1 = vpop.f32.mrb[2].mxu0 }
 0x11a   :  { %v218_v2 = vadd.f32 %v506_v1, %v93_v59  ;;  %v209_v3 = vpop.f32.mrb[3].mxu0  ;;  %v239_v6 = vmax.f32 %v215_v61, 0.0  ;;  %v420_v59 = vpop.permute.xlu0 %419 }
 0x11b   :  { %v210_v5 = vadd.f32 %v209_v3, %v83_v58  ;;  %v237_v8 = vmax.f32 %v207_v0, 0.0 }
 0x11c   :  { %v240_v7 = vmax.f32 %v218_v2, 0.0 }
 0x11d   :  { %v238_v9 = vmax.f32 %v210_v5, 0.0 }
 0x11e   :  { %v250_v10 = vpack.c.bf16 %v240_v7, %v239_v6  ;;  %v440_v7 = vpop.permute.xlu0 %439 }
 0x11f   :  { %v509_v12 = vpop.f32.mrb[4].mxu0  ;;  %v249_v13 = vpack.c.bf16 %v238_v9, %v237_v8 }
 0x120   :  { %v231_v14 = vadd.f32 %v509_v12, %v108_v11  ;;  %v222_v15 = vpop.f32.mrb[5].mxu0 }
 0x121   :  { %v223_v17 = vadd.f32 %v222_v15, %v98_v63  ;;  %v510_v18 = vpop.f32.mrb[6].mxu0  ;;  %511 = vmatprep.subr.bf16.mxu1 %v249_v13  ;;  %v442_v63 = vlaneseq }
 0x122   :  { %v234_v19 = vadd.f32 %v510_v18, %v113_v16  ;;  %v225_v20 = vpop.f32.mrb[7].mxu0  ;;  %512 = vmatpush3.bf16.msra.mxu1 %v249_v13  ;;  %v243_v22 = vmax.f32 %v231_v14, 0.0 }
 0x123   :  { %v226_v21 = vadd.f32 %v225_v20, %v103_v4  ;;  %513 = vmatprep.subr.bf16.mxu1 %v250_v10  ;;  %v241_v24 = vmax.f32 %v223_v17, 0.0  ;;  %v443_v2 = vshrl.u32 %v442_v63, 7 }
 0x124   :  { %v244_v23 = vmax.f32 %v234_v19, 0.0 }
 0x125   :  { %v242_v25 = vmax.f32 %v226_v21, 0.0  ;;  %v444_v5 = vsub.s32 0, %v443_v2 }
 0x126   :  { %v252_v26 = vpack.c.bf16 %v244_v23, %v243_v22  ;;  %514 = vmatpush3.bf16.msra.mxu1 %v250_v10 }
 0x127   :  { %v251_v27 = vpack.c.bf16 %v242_v25, %v241_v24  ;;  %v445_v9 = vrot.slane %v440_v7, %v444_v5 }
 0x129   :  { %515 = vmatprep.subr.bf16.mxu1 %v251_v27 }
 0x12a   :  { %516 = vmatpush3.bf16.msra.mxu1 %v251_v27 }
 0x12b   :  { %517 = vmatprep.subr.bf16.mxu1 %v252_v26 }
 0x12e   :  { %518 = vmatpush3.bf16.msra.mxu1 %v252_v26 }
 0x12f   :  { %523 = vmatprep.subr.bf16.mxu1 %v552_v29 }
 0x131   :  { %520 = vmatmul.mubr.msk.bf16.vlgmr.msra.gmra.mrb[0].mxu1 %vm287_vm1, %v549_v28 }
 0x132   :  { %527 = vmatprep.mubr.msk.bf16.mxu1 %vm553_vm2, %v552_v29 }
 0x204   :  { %v521_v33 = vpop.f32.mrb[0].mxu1 }
 0x205   :  { %v337_v34 = vadd.f32 %v521_v33, %v270_v32  ;;  %v328_v35 = vpop.f32.mrb[1].mxu1 }
 0x206   :  { %v329_v37 = vadd.f32 %v328_v35, %v260_v30  ;;  %v522_v38 = vpop.f32.mrb[2].mxu1 }
 0x207   :  { %v340_v39 = vadd.f32 %v522_v38, %v275_v36  ;;  %v331_v40 = vpop.f32.mrb[3].mxu1  ;;  %v345_v42 = vmax.f32 %v337_v34, 0.0 }
 0x208   :  { %v332_v41 = vadd.f32 %v331_v40, %v265_v31  ;;  %v343_v44 = vmax.f32 %v329_v37, 0.0 }
 0x209   :  { %v346_v43 = vmax.f32 %v340_v39, 0.0 }
 0x20a   :  { %v344_v45 = vmax.f32 %v332_v41, 0.0 }
 0x20b   :  { %v350_v46 = vpack.c.bf16 %v346_v43, %v345_v42 }
 0x20c   :  { %v349_v47 = vpack.c.bf16 %v344_v45, %v343_v44 }
 0x20e   :  { %524 = vmatpush3.bf16.msra.mxu1 %v349_v47 }
 0x20f   :  { %525 = vmatprep.subr.bf16.mxu1 %v552_v29 }
 0x212   :  { %526 = vmatpush3.bf16.msra.mxu1 %v350_v46 }
 0x215   :  { %528 = vmatmul.mubr.msk.bf16.vlgmr.msra.gmra.mrb[4].mxu1 %vm368_vm3, %v550_v48 }
 0x2e8   :  { %v406_v51 = vpop.f32.mrb[4].mxu1 }
 0x2e9   :  { %v407_v52 = vadd.f32 %v406_v51, %v356_v49  ;;  %v529_v53 = vpop.f32.mrb[5].mxu1 }
 0x2ea   :  { %v409_v54 = vpop.f32.mrb[6].mxu1 }
 0x2eb   :  { %v413_v55 = vmax.f32 %v407_v52, 0.0  ;;  %v410_v56 = vadd.f32 %v409_v54, %v361_v50  ;;  %v530_v57 = vpop.f32.mrb[7].mxu1 }
 0x2ed   :  { %v414_v58 = vmax.f32 %v410_v56, 0.0  ;;  %v427_v61 = vmul.f32 %v420_v59, %v413_v55 }
 0x2ef   :  { %v428_v62 = vmul.f32 %v425_v60, %v414_v58 }
 0x2f1   :  { %v429_v0 = vadd.f32 %v428_v62, %v427_v61 }
 0x2f3   :  { %v430_v1 = vrot.slane %v429_v0, 4 }
 0x2f5   :  { %v431_v3 = vadd.f32 %v430_v1, %v429_v0 }
 0x2f7   :  { %v432_v4 = vrot.slane %v431_v3, 2 }
 0x2f9   :  { %v433_v6 = vadd.f32 %v432_v4, %v431_v3 }
 0x2fb   :  { %v434_v8 = vrot.slane %v433_v6, 1 }
 0x2fd   :  { %v435_v10 = vadd.f32 %v434_v8, %v433_v6 }
 0x2ff   :  { %v446_v11 = vadd.f32 %v445_v9, %v435_v10 }
 0x301   :  { %447 = vst [vmem:[%s758_s9] sm:$0x1] %v446_v11 }

</bundles_post_ra>
